<compile_context>
chip_gen: v7x
topology: tpu7x:2x2x1
jax: 0.10.0
libtpu: 0.0.40
codegen_flags: <defaults>
</compile_context>

<pallas_src>
import jax
import jax.numpy as jnp
from jax.experimental import pallas as pl
from jax.experimental.pallas import tpu as pltpu


LANE = 128           # TPU lane width
TILE_B_MAX = 2048    # batch rows per grid step (per-step footprint ~1 MiB << 64 MiB v7x VMEM)


def _round_up(n, m):
    return (n + m - 1) // m * m


def mlp_kernel(x_ref, w1_ref, b1_ref, w2_ref, b2_ref, w3_ref, b3_ref, o_ref):
    """One batch tile: x_ref (3, TB) bf16 -> o_ref (1, TB) f32."""
    # Upcast once per tile; all elementwise work stays in f32.
    x = x_ref[...].astype(jnp.float32)          # (3, TB)
    w1 = w1_ref[...].astype(jnp.float32)        # (64, 3)

    # ---- Linear(3, 64) + ReLU: rank-3 update on the VPU (K=3 would waste an MXU pass).
    h1 = b1_ref[...]                            # (64, 1) f32, broadcasts along lanes
    for k in range(3):                          # 3 broadcast multiply-adds
        h1 = h1 + w1[:, k:k + 1] * x[k:k + 1, :]
    h1 = jnp.maximum(h1, 0.0)                   # (64, TB)

    # ---- Linear(64, 32) + ReLU: the only matmul worth the MXU. bf16 in, f32 accumulate.
    h2 = jnp.dot(w2_ref[...], h1.astype(jnp.bfloat16),
                 preferred_element_type=jnp.float32)        # (32, TB)
    h2 = jnp.maximum(h2 + b2_ref[...], 0.0)

    # ---- Linear(32, 1): 32 FMAs + one sublane (XLU) reduce into a lane-dense (1, TB) row.
    w3 = w3_ref[...].astype(jnp.float32)        # (32, 1)
    out = jnp.sum(w3 * h2, axis=0, keepdims=True) + b3_ref[0]
    o_ref[...] = out.astype(o_ref.dtype)        # (1, TB) -- unmasked, lane-dense store


def faang_forward(x, params, *, tile_b_max=TILE_B_MAX):
    """x: (B, 3) f32 -> (B, 1) f32. Params are in the transposed (out, in) bf16 layout."""
    w1, b1, w2, b2, w3, b3 = params
    B = x.shape[0]

    # Batch-on-lanes layout: (3, B) bf16, lane axis padded up to a whole number of tiles.
    xT = x.astype(jnp.bfloat16).T
    tile_b = min(tile_b_max, _round_up(B, LANE))
    b_pad = _round_up(B, tile_b)
    if b_pad != B:
        xT = jnp.pad(xT, ((0, 0), (0, b_pad - B)))
    grid = (b_pad // tile_b,)

    const = lambda shape: pl.BlockSpec(shape, lambda i: (0,) * len(shape))

    # VMEM budget: ~0.5 KiB per batch row (double-buffered bf16 x + f32 out tiles,
    # f32 intermediates) -> 2x headroom, floor of 4 MiB. Re-derived per tile size,
    # well under v7x's 64 MiB.
    vmem_limit = int(max(4 << 20, 2 * tile_b * 1024))

    outT = pl.pallas_call(
        mlp_kernel,
        out_shape=jax.ShapeDtypeStruct((1, b_pad), jnp.float32),
        grid=grid,
        in_specs=[
            pl.BlockSpec((3, tile_b), lambda i: (0, i)),        # x streams over batch
            const(w1.shape), const(b1.shape),                   # weights/biases resident
            const(w2.shape), const(b2.shape),
            const(w3.shape),
            pl.BlockSpec(memory_space=pltpu.MemorySpace.SMEM),  # scalar bias b3
        ],
        out_specs=pl.BlockSpec((1, tile_b), lambda i: (0, i)),
        compiler_params=pltpu.CompilerParams(
            dimension_semantics=("parallel",),
            vmem_limit_bytes=vmem_limit,
        ),
    )(xT, w1, b1, w2, b2, w3, b3)

    return outT[:, :B].T                                        # (B, 1)


def init_params(key):
    """nn.Linear default init (U(-1/sqrt(fan_in), +1/sqrt(fan_in))), stored in the
    kernel's layout: weights (out, in) in bf16, biases (out, 1) in f32."""
    def linear_init(key, fan_in, fan_out):
        kw, kb = jax.random.split(key)
        bound = 1.0 / jnp.sqrt(fan_in)
        w = jax.random.uniform(kw, (fan_out, fan_in), jnp.float32, -bound, bound)
        b = jax.random.uniform(kb, (fan_out, 1), jnp.float32, -bound, bound)
        return w, b

    k1, k2, k3 = jax.random.split(key, 3)
    w1, b1 = linear_init(k1, 3, 64)      # (64, 3), (64, 1)
    w2, b2 = linear_init(k2, 64, 32)     # (32, 64), (32, 1)
    w3, b3 = linear_init(k3, 32, 1)      # (1, 32), (1, 1)
    w3 = w3.T                            # (32, 1): avoids an in-kernel lane->sublane transpose
    b3 = b3.reshape((1,))                # true scalar -> SMEM
    return (w1.astype(jnp.bfloat16), b1,
            w2.astype(jnp.bfloat16), b2,
            w3.astype(jnp.bfloat16), b3)


def reference_forward(x, params):
    """Pure-JAX f32 reference using the same (bf16-quantized) weights."""
    w1, b1, w2, b2, w3, b3 = params
    w1f, w2f, w3f = (w.astype(jnp.float32) for w in (w1, w2, w3))
    h1 = jnp.maximum(x @ w1f.T + b1.T, 0.0)
    h2 = jnp.maximum(h1 @ w2f.T + b2.T, 0.0)
    return h2 @ w3f + b3[None, :]


if __name__ == "__main__":
    key = jax.random.PRNGKey(0)
    kp, kx = jax.random.split(key)

    params = init_params(kp)
    x = jax.random.normal(kx, (8, 3), dtype=jnp.float32)   # batch=8, in_features=3

    out = faang_forward(x, params)
    out = jax.block_until_ready(out)

    ref = reference_forward(x, params)
    assert out.shape == (8, 1), out.shape
    # Kernel feeds bf16 activations to the MXU (f32 accumulate); compare loosely vs f32 ref.
    assert jnp.allclose(out, ref, atol=5e-2, rtol=5e-2), (out, ref)

    print("KERNEL_OK")
</pallas_src>

<mosaic_0001>
module attributes {stable_mosaic.version = 11 : i64} {
  func.func @mlp_kernel(%arg0: i32, %arg1: memref<3x128xbf16, #tpu.memory_space<vmem>>, %arg2: memref<64x3xbf16, #tpu.memory_space<vmem>>, %arg3: memref<64x1xf32, #tpu.memory_space<vmem>>, %arg4: memref<32x64xbf16, #tpu.memory_space<vmem>>, %arg5: memref<32x1xf32, #tpu.memory_space<vmem>>, %arg6: memref<32x1xbf16, #tpu.memory_space<vmem>>, %arg7: memref<1xf32, #tpu.memory_space<smem>>, %arg8: memref<1x128xf32, #tpu.memory_space<vmem>>) attributes {dimension_semantics = [#tpu.dimension_semantics<parallel>], iteration_bounds = array<i64: 1>, scalar_prefetch = 0 : i64, scratch_operands = 0 : i64, tpu.core_type = #tpu.core_type<tc>, window_params = [{transform_indices = @transform_0, window_bounds = array<i64: 3, 128>}, {pipeline_mode = #tpu.pipeline_mode<synchronous>, transform_indices = @transform_1, window_bounds = array<i64: 64, 3>}, {pipeline_mode = #tpu.pipeline_mode<synchronous>, transform_indices = @transform_2, window_bounds = array<i64: 64, 1>}, {pipeline_mode = #tpu.pipeline_mode<synchronous>, transform_indices = @transform_3, window_bounds = array<i64: 32, 64>}, {pipeline_mode = #tpu.pipeline_mode<synchronous>, transform_indices = @transform_4, window_bounds = array<i64: 32, 1>}, {pipeline_mode = #tpu.pipeline_mode<synchronous>, transform_indices = @transform_5, window_bounds = array<i64: 32, 1>}, {transform_indices = @transform_6, window_bounds = array<i64: 1>}, {transform_indices = @transform_7, window_bounds = array<i64: 1, 128>}]} {
    %c0 = arith.constant 0 : index
    %c0_0 = arith.constant 0 : index
    %0 = vector.load %arg1[%c0, %c0_0] : memref<3x128xbf16, #tpu.memory_space<vmem>>, vector<3x128xbf16>
    %1 = arith.extf %0 : vector<3x128xbf16> to vector<3x128xf32>
    %c0_1 = arith.constant 0 : index
    %c0_2 = arith.constant 0 : index
    %2 = vector.load %arg2[%c0_1, %c0_2] : memref<64x3xbf16, #tpu.memory_space<vmem>>, vector<64x3xbf16>
    %3 = arith.extf %2 : vector<64x3xbf16> to vector<64x3xf32>
    %c0_3 = arith.constant 0 : index
    %c0_4 = arith.constant 0 : index
    %4 = vector.load %arg3[%c0_3, %c0_4] : memref<64x1xf32, #tpu.memory_space<vmem>>, vector<64x1xf32>
    %5 = vector.extract_strided_slice %3 {offsets = [0, 0], sizes = [64, 1], strides = [1, 1]} : vector<64x3xf32> to vector<64x1xf32>
    %6 = vector.extract_strided_slice %1 {offsets = [0, 0], sizes = [1, 128], strides = [1, 1]} : vector<3x128xf32> to vector<1x128xf32>
    %7 = vector.broadcast %5 : vector<64x1xf32> to vector<64x128xf32>
    %8 = vector.broadcast %6 : vector<1x128xf32> to vector<64x128xf32>
    %9 = arith.mulf %7, %8 : vector<64x128xf32>
    %10 = vector.broadcast %4 : vector<64x1xf32> to vector<64x128xf32>
    %11 = arith.addf %10, %9 : vector<64x128xf32>
    %12 = vector.extract_strided_slice %3 {offsets = [0, 1], sizes = [64, 1], strides = [1, 1]} : vector<64x3xf32> to vector<64x1xf32>
    %13 = vector.extract_strided_slice %1 {offsets = [1, 0], sizes = [1, 128], strides = [1, 1]} : vector<3x128xf32> to vector<1x128xf32>
    %14 = vector.broadcast %12 : vector<64x1xf32> to vector<64x128xf32>
    %15 = vector.broadcast %13 : vector<1x128xf32> to vector<64x128xf32>
    %16 = arith.mulf %14, %15 : vector<64x128xf32>
    %17 = arith.addf %11, %16 : vector<64x128xf32>
    %18 = vector.extract_strided_slice %3 {offsets = [0, 2], sizes = [64, 1], strides = [1, 1]} : vector<64x3xf32> to vector<64x1xf32>
    %19 = vector.extract_strided_slice %1 {offsets = [2, 0], sizes = [1, 128], strides = [1, 1]} : vector<3x128xf32> to vector<1x128xf32>
    %20 = vector.broadcast %18 : vector<64x1xf32> to vector<64x128xf32>
    %21 = vector.broadcast %19 : vector<1x128xf32> to vector<64x128xf32>
    %22 = arith.mulf %20, %21 : vector<64x128xf32>
    %23 = arith.addf %17, %22 : vector<64x128xf32>
    %cst = arith.constant 0.000000e+00 : f32
    %24 = vector.broadcast %cst : f32 to vector<64x128xf32>
    %25 = arith.maximumf %23, %24 : vector<64x128xf32>
    %c0_5 = arith.constant 0 : index
    %c0_6 = arith.constant 0 : index
    %26 = vector.load %arg4[%c0_5, %c0_6] : memref<32x64xbf16, #tpu.memory_space<vmem>>, vector<32x64xbf16>
    %27 = arith.truncf %25 : vector<64x128xf32> to vector<64x128xbf16>
    %cst_7 = arith.constant dense<0.000000e+00> : vector<32x128xf32>
    %28 = tpu.matmul %26, %27, %cst_7 {dimension_numbers = #tpu.dot_dimension_numbers<[1], [0], [0], [1], [0, 0, 1, 1], [], []>} : vector<32x64xbf16>, vector<64x128xbf16>, vector<32x128xf32> -> vector<32x128xf32>
    %c0_8 = arith.constant 0 : index
    %c0_9 = arith.constant 0 : index
    %29 = vector.load %arg5[%c0_8, %c0_9] : memref<32x1xf32, #tpu.memory_space<vmem>>, vector<32x1xf32>
    %30 = vector.broadcast %29 : vector<32x1xf32> to vector<32x128xf32>
    %31 = arith.addf %28, %30 : vector<32x128xf32>
    %cst_10 = arith.constant 0.000000e+00 : f32
    %32 = vector.broadcast %cst_10 : f32 to vector<32x128xf32>
    %33 = arith.maximumf %31, %32 : vector<32x128xf32>
    %c0_11 = arith.constant 0 : index
    %c0_12 = arith.constant 0 : index
    %34 = vector.load %arg6[%c0_11, %c0_12] : memref<32x1xbf16, #tpu.memory_space<vmem>>, vector<32x1xbf16>
    %35 = arith.extf %34 : vector<32x1xbf16> to vector<32x1xf32>
    %36 = vector.broadcast %35 : vector<32x1xf32> to vector<32x128xf32>
    %37 = arith.mulf %36, %33 : vector<32x128xf32>
    %cst_13 = arith.constant dense<0.000000e+00> : vector<128xf32>
    %38 = vector.multi_reduction <add>, %37, %cst_13 [0] : vector<32x128xf32> to vector<128xf32>
    %39 = vector.shape_cast %38 : vector<128xf32> to vector<1x128xf32>
    %c0_14 = arith.constant 0 : index
    %40 = memref.load %arg7[%c0_14] : memref<1xf32, #tpu.memory_space<smem>>
    %41 = vector.broadcast %40 : f32 to vector<1x128xf32>
    %42 = arith.addf %39, %41 : vector<1x128xf32>
    %c0_15 = arith.constant 0 : index
    %c0_16 = arith.constant 0 : index
    %43 = vector.load %arg8[%c0_15, %c0_16] : memref<1x128xf32, #tpu.memory_space<vmem>>, vector<1x128xf32>
    tpu.vector_store %arg8[%c0_15, %c0_16], %42 {strides = array<i32>} : memref<1x128xf32, #tpu.memory_space<vmem>>, vector<1x128xf32>,
    return
  }
  func.func @transform_0(%arg0: i32) -> (i32, i32) {
    %c0_i32 = arith.constant 0 : i32
    %c0_i32_0 = arith.constant 0 : i32
    return %c0_i32, %arg0 : i32, i32
  }
  func.func @transform_1(%arg0: i32) -> (i32, i32) {
    %c0_i32 = arith.constant 0 : i32
    %c0_i32_0 = arith.constant 0 : i32
    %c0_i32_1 = arith.constant 0 : i32
    return %c0_i32, %c0_i32_0 : i32, i32
  }
  func.func @transform_2(%arg0: i32) -> (i32, i32) {
    %c0_i32 = arith.constant 0 : i32
    %c0_i32_0 = arith.constant 0 : i32
    %c0_i32_1 = arith.constant 0 : i32
    return %c0_i32, %c0_i32_0 : i32, i32
  }
  func.func @transform_3(%arg0: i32) -> (i32, i32) {
    %c0_i32 = arith.constant 0 : i32
    %c0_i32_0 = arith.constant 0 : i32
    %c0_i32_1 = arith.constant 0 : i32
    return %c0_i32, %c0_i32_0 : i32, i32
  }
  func.func @transform_4(%arg0: i32) -> (i32, i32) {
    %c0_i32 = arith.constant 0 : i32
    %c0_i32_0 = arith.constant 0 : i32
    %c0_i32_1 = arith.constant 0 : i32
    return %c0_i32, %c0_i32_0 : i32, i32
  }
  func.func @transform_5(%arg0: i32) -> (i32, i32) {
    %c0_i32 = arith.constant 0 : i32
    %c0_i32_0 = arith.constant 0 : i32
    %c0_i32_1 = arith.constant 0 : i32
    return %c0_i32, %c0_i32_0 : i32, i32
  }
  func.func @transform_6(%arg0: i32) -> i32 {
    %c0_i32 = arith.constant 0 : i32
    %c0_i32_0 = arith.constant 0 : i32
    return %c0_i32 : i32
  }
  func.func @transform_7(%arg0: i32) -> (i32, i32) {
    %c0_i32 = arith.constant 0 : i32
    %c0_i32_0 = arith.constant 0 : i32
    return %c0_i32, %arg0 : i32, i32
  }
}

</mosaic_0001>

<bundles_post_ra>
// kernel: tpu_custom_call.1
= control target key start
LH: loop header
LB: loop body
LE: loop exit
PB: predicated region body
PF: predicated region fallthrough
CT: control target
= control target key end

     0   :  { %v588_v3 = vmov 0   ;;  %v589_v4 = vmov 1   ;;  %s742_s0 = inlined_call_operand.vmem [shape: bf16[3,128], index: 0, kind: input, shape index: {}]   ;;  %s743_s1 = inlined_call_operand.vmem [shape: bf16[64,3], index: 1, kind: input, shape index: {}]   ;;  %s744_s2 = inlined_call_operand.vmem [shape: f32[64,1], index: 2, kind: input, shape index: {}]   ;;  %s745_s3 = inlined_call_operand.vmem [shape: bf16[32,64], index: 3, kind: input, shape index: {}]   ;;  %s746_s4 = inlined_call_operand.vmem [shape: f32[32,1], index: 4, kind: input, shape index: {}]   ;;  %s747_s5 = inlined_call_operand.vmem [shape: bf16[32,1], index: 5, kind: input, shape index: {}]   ;;  %s748_s6 = inlined_call_operand.<no memory space> [shape: f32[1], index: 6, kind: input, shape index: {}]   ;;  %s749_s7 = inlined_call_operand.hbm [shape: f32[1,128], index: 7, kind: output, shape index: {}]  }
   0x1   :  { %v48_v0 = vld [vmem:[%s744_s2 + $0x8] sm:$0xff]  ;;  %v433_v2 = vld [vmem:[%s743_s1] sm:$0xff]   ;;  %482 = vset.pattern.permute.xlu1 %v588_v3  ;;  %496 = vset.pattern.permute.xlu0 %v589_v4 }
   0x2   :  { %v456_v1 = vld [vmem:[%s743_s1 + $0x8] sm:$0xff]   ;;  %v434_v7 = vunpack.c.l.bf16 %v433_v2  ;;  %v435_v8 = vunpack.c.h.bf16 %v433_v2  ;;  %114 = vperm.xlu1 %482, %v48_v0  }
   0x3   :  { %v438_v5 = vunpack.c.l.bf16 %v456_v1  ;;  %v439_v6 = vunpack.c.h.bf16 %v456_v1 }
   0x4   :  { %v484_v10 = vpack.i.bf16 %v435_v8, %v434_v7 }
   0x5   :  { %v497_v9 = vpack.i.bf16 %v439_v6, %v438_v5 }
   0x6   :  { %483 = vset.pattern.permute.xlu1 %v589_v4 }
   0x7   :  { %498 = vperm.xlu0 %496, %v497_v9  }
   0x8   :  { %13 = vsyncpa [#allocation4], 0  ;;  %485 = vperm.xlu1 %483, %v484_v10   ;;  %v457_v11 = vld [vmem:[%s743_s1 + $0x10] sm:$0xff]   ;;  %v590_v12 = vmov 2   ;;  %v47_v13 = vld [vmem:[%s744_s2] sm:$0xff]  ;;  %vm309_vm0 = vcmask 523264   ;;  %v95_v39 = vlaneseq }
   0x9   :  { %v442_v14 = vunpack.c.l.bf16 %v457_v11  ;;  %v443_v15 = vunpack.c.h.bf16 %v457_v11  ;;  %v50_v16 = vld [vmem:[%s744_s2 + $0x18] sm:$0xff]  ;;  %v49_v18 = vld [vmem:[%s744_s2 + $0x10] sm:$0xff]  ;;  %v51_v22 = vld [vmem:[%s744_s2 + $0x20] sm:$0xff]  ;;  %s591_s16 = smov [#allocation3]  }
   0xa   :  { %v458_v19 = vld [vmem:[%s743_s1 + $0x18] sm:$0xff]   ;;  %v52_v24 = vld [vmem:[%s744_s2 + $0x28] sm:$0xff]  ;;  %v53_v25 = vld [vmem:[%s744_s2 + $0x30] sm:$0xff]  ;;  %v96_v41 = vshrl.u32 %v95_v39, 7  ;;  %s420_s17 = sshll.u32 %s591_s16, 4  ;;  %s421_s17 = int_to_ptr.vmem [resolvable:$true] %s420_s17 }
   0xb   :  { %502 = vset.pattern.permute.xlu0 %v588_v3  ;;  %v513_v17 = vpack.i.bf16 %v443_v15, %v442_v14  ;;  %v446_v20 = vunpack.c.l.bf16 %v458_v19  ;;  %v447_v21 = vunpack.c.h.bf16 %v458_v19  ;;  %v54_v26 = vld [vmem:[%s744_s2 + $0x38] sm:$0xff]  ;;  %v562_v27 = vld [vmem:[%s745_s3] sm:$0xff]   ;;  %v276_v29 = vld [vmem:[%s746_s4 + $0x8] sm:$0xff]  ;;  %s564_s18 = scalar_lea.vmem %s421_s17, 16  ;;  %s568_s19 = scalar_lea.vmem %s421_s17, 32 }
   0xc   :  { %504 = vperm.xlu0 %502, %v484_v10   ;;  %489 = vset.pattern.permute.xlu1 %v590_v12  ;;  %v275_v28 = vld [vmem:[%s746_s4] sm:$0xff]  ;;  %v277_v31 = vld [vmem:[%s746_s4 + $0x10] sm:$0xff]  ;;  %v459_v35 = vld [vmem:[%s747_s5 + $0x8] sm:$0xff]   ;;  %v97_v44 = vsub.s32 0, %v96_v41  ;;  %v189_v45 = vsub.s32 1, %v96_v41  ;;  %v241_v48 = vsub.s32 2, %v96_v41  ;;  %p565_p0 = scmp.ne.s32.totalorder %s421_s17, %s564_s18  ;;  %p569_p1 = scmp.lt.s32.totalorder %s421_s17, %s421_s17 }
   0xd   :  { %491 = vperm.xlu1 %489, %v484_v10   ;;  %v531_v23 = vpack.i.bf16 %v447_v21, %v446_v20  ;;  %474 = vmatprep.mubr.msk.bf16.mxu0 %vm309_vm0, %v562_v27  ;;  %v449_v30 = vld [vmem:[%s747_s5] sm:$0xff]   ;;  %v278_v36 = vld [vmem:[%s746_s4 + $0x18] sm:$0xff]  ;;  %v455_v37 = vunpack.c.h.bf16 %v459_v35  ;;  %v454_v38 = vunpack.c.l.bf16 %v459_v35  ;;  %p570_p2 = scmp.lt.s32.totalorder %s568_s19, %s564_s18 }
   0xe   :  { %v450_v32 = vunpack.c.l.bf16 %v449_v30  ;;  %v451_v33 = vunpack.c.h.bf16 %v449_v30  ;;  %v29_v42 = vld [vmem:[%s742_s0] sm:$0x3] }
   0xf   :  { %v30_v46 = vunpack.c.l.bf16 %v29_v42  ;;  %p571_p3 = por %p570_p2, %p569_p1 }
  0x10   :  { %109 = vperm.xlu0 %502, %v47_v13   ;;  %v557_v34 = vpack.i.bf16 %v451_v33, %v450_v32 }
  0x11   :  { %495 = vset.pattern.permute.xlu1 %v588_v3  ;;  %v693_v49 = vrot.slane %v30_v46, %v97_v44  ;;  %v695_v50 = vrot.slane %v30_v46, %v189_v45  ;;  %v697_v57 = vrot.slane %v30_v46, %v241_v48  ;;  %p572_p4 = pnand %p571_p3, %p565_p0 }
  0x12   :  { %124 = vperm.xlu1 %495, %v50_v16  }
  0x14   :  { %509 = vperm.xlu0 %502, %v497_v9  }
  0x16   :  { %514 = vperm.xlu1 %495, %v513_v17  }
  0x18   :  { %119 = vperm.xlu0 %502, %v49_v18  }
  0x1a   :  { %518 = vset.pattern.permute.xlu1 %v590_v12 }
  0x1b   :  { %520 = vperm.xlu1 %518, %v497_v9  }
  0x1c   :  { %129 = vperm.xlu0 %502, %v51_v22  }
  0x1f   :  { %524 = vset.pattern.permute.xlu1 %v588_v3 }
  0x20   :  { %532 = vperm.xlu0 %502, %v531_v23   ;;  %134 = vperm.xlu1 %524, %v52_v24  }
  0x24   :  { %139 = vperm.xlu0 %502, %v53_v25   ;;  %525 = vset.pattern.permute.xlu1 %v589_v4 }
  0x25   :  { %527 = vperm.xlu1 %525, %v513_v17  }
  0x28   :  { %543 = vset.pattern.permute.xlu0 %v589_v4 }
  0x29   :  { %545 = vperm.xlu0 %543, %v531_v23   ;;  %536 = vset.pattern.permute.xlu1 %v590_v12 }
  0x2a   :  { %538 = vperm.xlu1 %536, %v513_v17  }
  0x2d   :  { %556 = vset.pattern.permute.xlu0 %v588_v3 }
  0x2e   :  { %542 = vset.pattern.permute.xlu1 %v588_v3  ;;  %286 = vperm.xlu0 %556, %v276_v29  }
  0x2f   :  { %144 = vperm.xlu1 %542, %v54_v26  }
  0x32   :  { %558 = vperm.xlu0 %556, %v557_v34  }
  0x33   :  { %549 = vset.pattern.permute.xlu1 %v590_v12 }
  0x34   :  { %551 = vperm.xlu1 %549, %v531_v23  }
  0x36   :  { %394 = vperm.xlu0 %556, %v455_v37  }
  0x38   :  { %555 = vset.pattern.permute.xlu1 %v588_v3 }
  0x39   :  { %281 = vperm.xlu1 %555, %v275_v28  }
  0x3d   :  { %291 = vperm.xlu1 %555, %v277_v31  }
  0x41   :  { %296 = vperm.xlu1 %555, %v278_v36  }
  0x45   :  { %389 = vperm.xlu1 %555, %v454_v38  }
  0x81   :  { %v115_v40 = vpop.permute.xlu1 %114 }
  0x86   :  { %v499_v43 = vpop.permute.xlu0 %498 }
  0x87   :  { %v486_v47 = vpop.permute.xlu1 %485  ;;  %v501_v19 = vunpack.i.h.bf16 %v499_v43  ;;  %v500_v20 = vunpack.i.l.bf16 %v499_v43 }
  0x88   :  { %v488_v52 = vunpack.i.h.bf16 %v486_v47  ;;  %v487_v53 = vunpack.i.l.bf16 %v486_v47 }
  0x89   :  { %v193_v26 = vmul.f32 %v500_v20, %v695_v50  ;;  %v194_v27 = vmul.f32 %v501_v19, %v695_v50 }
  0x8a   :  { %v191_v63 = vmul.f32 %v487_v53, %v695_v50  ;;  %v192_v0 = vmul.f32 %v488_v52, %v695_v50 }
  0x8b   :  { %v505_v51 = vpop.permute.xlu0 %504 }
  0x8c   :  { %v507_v54 = vunpack.i.h.bf16 %v505_v51  ;;  %v506_v55 = vunpack.i.l.bf16 %v505_v51  ;;  %v492_v56 = vpop.permute.xlu1 %491 }
  0x8d   :  { %v494_v59 = vunpack.i.h.bf16 %v492_v56  ;;  %v493_v60 = vunpack.i.l.bf16 %v492_v56 }
  0x8e   :  { %v100_v58 = vmul.f32 %v507_v54, %v693_v49  ;;  %v99_v61 = vmul.f32 %v506_v55, %v693_v49 }
  0x8f   :  { %v110_v62 = vpop.permute.xlu0 %109  ;;  %v243_v3 = vmul.f32 %v493_v60, %v697_v57  ;;  %v244_v4 = vmul.f32 %v494_v59, %v697_v57 }
  0x90   :  { %v148_v1 = vadd.f32 %v115_v40, %v100_v58  ;;  %v147_v2 = vadd.f32 %v110_v62, %v99_v61 }
  0x91   :  { %v125_v6 = vpop.permute.xlu1 %124 }
  0x92   :  { %v199_v5 = vadd.f32 %v191_v63, %v147_v2  ;;  %v200_v7 = vadd.f32 %v192_v0, %v148_v1 }
  0x93   :  { %v510_v8 = vpop.permute.xlu0 %509 }
  0x94   :  { %v512_v9 = vunpack.i.h.bf16 %v510_v8  ;;  %v511_v10 = vunpack.i.l.bf16 %v510_v8  ;;  %v251_v11 = vadd.f32 %v243_v3, %v199_v5  ;;  %v252_v12 = vadd.f32 %v244_v4, %v200_v7 }
  0x95   :  { %v515_v14 = vpop.permute.xlu1 %514 }
  0x96   :  { %v102_v13 = vmul.f32 %v512_v9, %v693_v49  ;;  %v101_v15 = vmul.f32 %v511_v10, %v693_v49  ;;  %v259_v16 = vmax.f32 %v251_v11, 0.0  ;;  %v260_v17 = vmax.f32 %v252_v12, 0.0 }
  0x97   :  { %v120_v18 = vpop.permute.xlu0 %119  ;;  %v516_v40 = vunpack.i.l.bf16 %v515_v14  ;;  %v517_v42 = vunpack.i.h.bf16 %v515_v14 }
  0x98   :  { %v271_v21 = vpack.c.bf16 %v260_v17, %v259_v16  ;;  %v150_v22 = vadd.f32 %v125_v6, %v102_v13  ;;  %v149_v23 = vadd.f32 %v120_v18, %v101_v15 }
  0x99   :  { %v103_v47 = vmul.f32 %v516_v40, %v693_v49  ;;  %v104_v48 = vmul.f32 %v517_v42, %v693_v49 }
  0x9a   :  { %466 = vmatprep.subr.bf16.mxu0 %v271_v21  ;;  %v521_v25 = vpop.permute.xlu1 %520  ;;  %v201_v30 = vadd.f32 %v193_v26, %v149_v23  ;;  %v202_v31 = vadd.f32 %v194_v27, %v150_v22 }
  0x9b   :  { %v130_v24 = vpop.permute.xlu0 %129  ;;  %467 = vmatpush3.bf16.msra.mxu0 %v271_v21  ;;  %v523_v28 = vunpack.i.h.bf16 %v521_v25  ;;  %v522_v29 = vunpack.i.l.bf16 %v521_v25 }
  0x9c   :  { %v151_v54 = vadd.f32 %v130_v24, %v103_v47 }
  0x9d   :  { %v245_v32 = vmul.f32 %v522_v29, %v697_v57  ;;  %v246_v33 = vmul.f32 %v523_v28, %v697_v57 }
  0x9f   :  { %v253_v34 = vadd.f32 %v245_v32, %v201_v30  ;;  %v254_v35 = vadd.f32 %v246_v33, %v202_v31  ;;  %v533_v36 = vpop.permute.xlu0 %532  ;;  %v135_v37 = vpop.permute.xlu1 %134 }
  0xa0   :  { %v152_v55 = vadd.f32 %v135_v37, %v104_v48  ;;  %v535_v59 = vunpack.i.h.bf16 %v533_v36  ;;  %v534_v60 = vunpack.i.l.bf16 %v533_v36 }
  0xa1   :  { %v261_v38 = vmax.f32 %v253_v34, 0.0  ;;  %v262_v39 = vmax.f32 %v254_v35, 0.0 }
  0xa2   :  { %v105_v7 = vmul.f32 %v534_v60, %v693_v49  ;;  %v106_v8 = vmul.f32 %v535_v59, %v693_v49 }
  0xa3   :  { %v272_v41 = vpack.c.bf16 %v262_v39, %v261_v38  ;;  %v140_v44 = vpop.permute.xlu0 %139 }
  0xa4   :  { %v528_v43 = vpop.permute.xlu1 %527  ;;  %v153_v16 = vadd.f32 %v140_v44, %v105_v7 }
  0xa5   :  { %v530_v45 = vunpack.i.h.bf16 %v528_v43  ;;  %v529_v46 = vunpack.i.l.bf16 %v528_v43  ;;  %468 = vmatprep.subr.bf16.mxu0 %v272_v41 }
  0xa6   :  { %469 = vmatpush3.bf16.msra.mxu0 %v272_v41 }
  0xa7   :  { %v195_v51 = vmul.f32 %v529_v46, %v695_v50  ;;  %v196_v52 = vmul.f32 %v530_v45, %v695_v50 }
  0xa8   :  { %v546_v61 = vpop.permute.xlu0 %545 }
  0xa9   :  { %v539_v53 = vpop.permute.xlu1 %538  ;;  %v203_v62 = vadd.f32 %v195_v51, %v151_v54  ;;  %v204_v63 = vadd.f32 %v196_v52, %v152_v55  ;;  %v548_v2 = vunpack.i.h.bf16 %v546_v61  ;;  %v547_v3 = vunpack.i.l.bf16 %v546_v61 }
  0xaa   :  { %v541_v56 = vunpack.i.h.bf16 %v539_v53  ;;  %v540_v58 = vunpack.i.l.bf16 %v539_v53 }
  0xab   :  { %v197_v11 = vmul.f32 %v547_v3, %v695_v50  ;;  %v198_v12 = vmul.f32 %v548_v2, %v695_v50  ;;  %v563_v50 = vld [vmem:[%s745_s3 + $0x8] sm:$0xff]  }
  0xac   :  { %v247_v0 = vmul.f32 %v540_v58, %v697_v57  ;;  %v248_v1 = vmul.f32 %v541_v56, %v697_v57 }
  0xad   :  { %v205_v19 = vadd.f32 %v197_v11, %v153_v16  ;;  %v287_v29 = vpop.permute.xlu0 %286 }
  0xae   :  { %v255_v4 = vadd.f32 %v247_v0, %v203_v62  ;;  %v256_v5 = vadd.f32 %v248_v1, %v204_v63  ;;  %v145_v6 = vpop.permute.xlu1 %144  ;;  %v411_v62 = vstv %s748_s6 }
  0xaf   :  { %v154_v13 = vadd.f32 %v145_v6, %v106_v8 }
  0xb0   :  { %v263_v9 = vmax.f32 %v255_v4, 0.0  ;;  %v264_v10 = vmax.f32 %v256_v5, 0.0 }
  0xb1   :  { %v206_v20 = vadd.f32 %v198_v12, %v154_v13  ;;  %v559_v39 = vpop.permute.xlu0 %558 }
  0xb2   :  { %v273_v14 = vpack.c.bf16 %v264_v10, %v263_v9  ;;  %v561_v40 = vunpack.i.h.bf16 %v559_v39  ;;  %v560_v41 = vunpack.i.l.bf16 %v559_v39 }
  0xb3   :  { %v552_v15 = vpop.permute.xlu1 %551 }
  0xb4   :  { %v554_v17 = vunpack.i.h.bf16 %v552_v15  ;;  %v553_v18 = vunpack.i.l.bf16 %v552_v15  ;;  %470 = vmatprep.subr.bf16.mxu0 %v273_v14 }
  0xb5   :  { %471 = vmatpush3.bf16.msra.mxu0 %v273_v14  ;;  %v395_v52 = vpop.permute.xlu0 %394 }
  0xb6   :  { %v249_v21 = vmul.f32 %v553_v18, %v697_v57  ;;  %v250_v49 = vmul.f32 %v554_v17, %v697_v57 }
  0xb8   :  { %v257_v22 = vadd.f32 %v249_v21, %v205_v19  ;;  %v258_v23 = vadd.f32 %v250_v49, %v206_v20  ;;  %v282_v27 = vpop.permute.xlu1 %281 }
  0xba   :  { %v265_v24 = vmax.f32 %v257_v22, 0.0  ;;  %v266_v25 = vmax.f32 %v258_v23, 0.0 }
  0xbc   :  { %v274_v26 = vpack.c.bf16 %v266_v25, %v265_v24  ;;  %v292_v28 = vpop.permute.xlu1 %291 }
  0xbe   :  { %472 = vmatprep.subr.bf16.mxu0 %v274_v26 }
  0xbf   :  { %473 = vmatpush3.bf16.msra.mxu0 %v274_v26 }
  0xc0   :  { %v297_v34 = vpop.permute.xlu1 %296 }
  0xc2   :  { %475 = vmatmul.mubr.msk.bf16.vlgmr.msra.gmra.mrb[0].mxu0 %vm309_vm0, %v563_v50 }
  0xc4   :  { %v390_v47 = vpop.permute.xlu1 %389 }
 0x195   :  { %v476_v30 = vpop.f32.mrb[0].mxu0 }
 0x196   :  { %v350_v31 = vpop.f32.mrb[1].mxu0  ;;  %v359_v32 = vadd.f32 %v476_v30, %v292_v28 }
 0x197   :  { %v351_v57 = vadd.f32 %v350_v31, %v282_v27  ;;  %v477_v33 = vpop.f32.mrb[2].mxu0 }
 0x198   :  { %v353_v35 = vpop.f32.mrb[3].mxu0  ;;  %v362_v37 = vadd.f32 %v477_v33, %v297_v34  ;;  %v367_v42 = vmax.f32 %v359_v32, 0.0 }
 0x199   :  { %v365_v36 = vmax.f32 %v351_v57, 0.0  ;;  %v354_v38 = vadd.f32 %v353_v35, %v287_v29 }
 0x19a   :  { %v368_v45 = vmax.f32 %v362_v37, 0.0  ;;  %v399_v48 = vmul.f32 %v390_v47, %v367_v42 }
 0x19b   :  { %v366_v43 = vmax.f32 %v354_v38, 0.0  ;;  %v397_v44 = vmul.f32 %v560_v41, %v365_v36 }
 0x19c   :  { %v400_v53 = vmul.f32 %v395_v52, %v368_v45 }
 0x19d   :  { %v398_v46 = vmul.f32 %v561_v40, %v366_v43 }
 0x19f   :  { %v401_v51 = vadd.f32 %v398_v46, %v397_v44 }
 0x1a1   :  { %v402_v54 = vadd.f32 %v401_v51, %v399_v48 }
 0x1a3   :  { %v403_v55 = vadd.f32 %v402_v54, %v400_v53 }
 0x1a5   :  { %v404_v56 = vrot.slane %v403_v55, 4 }
 0x1a7   :  { %v405_v58 = vadd.f32 %v404_v56, %v403_v55 }
 0x1a9   :  { %v406_v59 = vrot.slane %v405_v58, 2 }
 0x1ab   :  { %v407_v60 = vadd.f32 %v406_v59, %v405_v58 }
 0x1ad   :  { %v408_v61 = vrot.slane %v407_v60, 1 }
 0x1af   :  { %v409_v63 = vadd.f32 %v408_v61, %v407_v60 }
 0x1b1   :  { %v412_v0 = vadd.f32 %v411_v62, %v409_v63 }
 0x1b3   :  { %413 = vst [vmem:[#allocation3] sm:$0x1] %v412_v0 }
 0x1b4   :  { %575 = shalt.err (!%p572_p4)
}
 0x1b5   :  { %s576_s21 = scalar_lea.hbm %s749_s7, 16 }
 0x1b6   :  { %p577_p5 = scmp.ne.s32.totalorder %s749_s7, %s576_s21  ;;  %p580_p6 = scmp.lt.u32.totalorder %s576_s21, %s749_s7 }
 0x1b8   :  { %p582_p7 = pnand %p580_p6, %p577_p5 }
 0x1ba   :  { %585 = shalt.err (!%p582_p7)
}
 0x1bb   :  { %423 = dma.vmem_to_hbm [thread:$0]  %s421_s17, 16, %s749_s7, [#allocation4]  }
 0x1bc   :  { %586 = dma.done.wait [#allocation4], 16  }
 0x1bd   :  { %587 = vsyncadd [#allocation4], 4294967280 }
 0x1be   :  { %427 = vsyncpa [#allocation4], 1 }

</bundles_post_ra>
